<compile_context>
chip_gen: v6e
topology: v6e:2x2x1
jax: 0.10.0
libtpu: 0.0.40
codegen_flags: <defaults>
</compile_context>

<pallas_src>
import numpy as np
import jax
import jax.numpy as jnp
from jax import lax
from jax.experimental import pallas as pl
from jax.experimental.pallas import tpu as pltpu

_LANES = 128
_SUB = 8


def _round_up(x, m):
    return (x + m - 1) // m * m


def lr_kernel(idx_ref, table_ref, dense_ref, wst_ref, wdt_ref, b_ref, out_ref):
    """One grid step handles `gpt` groups of 128 batch rows (batch along lanes).

    idx_ref   : (gpt, Sp, 128) int32  flat indices into the concatenated table
    table_ref : (C, 128)       f32    concatenated 1-d embedding tables (128-lane chunks)
    dense_ref : (gpt, Nd, 128) f32    dense features, batch along lanes
    wst_ref   : (Sp, 1)        f32    fc weights for sparse slots (zeros in pad rows)
    wdt_ref   : (Nd, 1)        f32    fc weights for dense slots
    b_ref     : (1, 1)         f32    fc bias (SMEM scalar)
    out_ref   : (gpt, 128)     f32    lane-dense output rows
    """
    gpt = out_ref.shape[0]
    sp = idx_ref.shape[1]
    n_chunks, lanes = table_ref.shape

    wst = wst_ref[...]
    wdt = wdt_ref[...]
    bias = b_ref[0, 0]

    # Hoist the sublane-broadcast of the table chunk(s) out of the group loop
    # (JAX does not CSE broadcast_in_dim).
    srcs = [jnp.broadcast_to(table_ref[c:c + 1, :], (sp, lanes))
            for c in range(n_chunks)]

    def body(g, carry):
        idx_g = idx_ref[g]                                    # (Sp, 128)
        lane_id = jnp.bitwise_and(idx_g, lanes - 1)           # lane within a chunk, always in-bounds
        gath = jnp.take_along_axis(
            srcs[0], lane_id, axis=1,
            mode=jax.lax.GatherScatterMode.PROMISE_IN_BOUNDS)
        if n_chunks == 1:
            emb = gath                                        # (Sp, 128)
        else:
            # Large-vocab path: pick the gathered value from the matching
            # 128-entry table chunk (compares over (Sp,128), not (.,R)).
            chunk_id = jnp.right_shift(idx_g, 7)
            emb = jnp.where(chunk_id == 0, gath, 0.0)
            for c in range(1, n_chunks):
                gath_c = jnp.take_along_axis(
                    srcs[c], lane_id, axis=1,
                    mode=jax.lax.GatherScatterMode.PROMISE_IN_BOUNDS)
                emb = jnp.where(chunk_id == c, gath_c, emb)

        # Weighted sums over the (small) feature axis = sublane reductions (XLU),
        # producing a lane-dense (1, 128) result row directly.
        acc = jnp.sum(emb * wst, axis=0, keepdims=True)                       # sparse part
        acc = acc + jnp.sum(dense_ref[g] * wdt, axis=0, keepdims=True)        # dense part
        out_ref[pl.ds(g, 1), :] = acc + bias
        return carry

    lax.fori_loop(0, gpt, body, 0, unroll=(gpt <= 8))


def lr_layer_forward(sparse_idx, dense, emb_tables, fc_w, fc_b):
    """sparse_idx: (B, S) int; dense: (B, Nd) f32;
    emb_tables: list of (V_i + 1, 1) f32; fc_w: (1, S+Nd) f32; fc_b: (1,) f32."""
    B, S = sparse_idx.shape
    Nd = dense.shape[1] if dense.ndim == 2 else 0
    if Nd == 0:  # no dense features: use a zero dummy column with zero weight
        dense = jnp.zeros((B, 1), jnp.float32)
        Nd = 1
        wd_vals = jnp.zeros((1,), jnp.float32)
    else:
        wd_vals = fc_w[0, S:].astype(jnp.float32)

    # Static numpy offsets into the concatenated table (constant-folded).
    sizes = [int(t.shape[0]) for t in emb_tables]
    offsets = np.cumsum([0] + sizes[:-1]).astype(np.int32)          # (S,)
    R = int(np.sum(sizes))
    C = max(1, -(-R // _LANES))                                     # table chunks of 128

    Sp = _round_up(S, _SUB)                                         # clean (8,128) vregs

    # ---- batch tiling: 128 rows per lane group, `gpt` groups per grid step.
    G = -(-B // _LANES)
    if G >= 16:
        gpt = 8 if G < 64 else 32           # >=2 grid steps -> megacore on v7x
        G_pad = _round_up(G, gpt)
    else:
        gpt = G                              # single grid step (full-array blocks)
        G_pad = G
    B_pad = G_pad * _LANES
    grid = (G_pad // gpt,)

    # ---- inputs: one fused XLA pass each (offset-add + pad + transpose).
    idx_flat = sparse_idx.astype(jnp.int32) + jnp.asarray(offsets)[None, :]
    idx_flat = jnp.pad(idx_flat, ((0, B_pad - B), (0, Sp - S)))
    idx_t = idx_flat.reshape(G_pad, _LANES, Sp).transpose(0, 2, 1)   # (G_pad, Sp, 128)

    dense_p = jnp.pad(dense.astype(jnp.float32), ((0, B_pad - B), (0, 0)))
    dense_t = dense_p.reshape(G_pad, _LANES, Nd).transpose(0, 2, 1)  # (G_pad, Nd, 128)

    flat_table = jnp.concatenate([t[:, 0].astype(jnp.float32) for t in emb_tables])
    table_p = jnp.pad(flat_table, (0, C * _LANES - R)).reshape(C, _LANES)

    ws_t = jnp.zeros((Sp, 1), jnp.float32).at[:S, 0].set(fc_w[0, :S].astype(jnp.float32))
    wd_t = wd_vals.reshape(Nd, 1)
    b_p = fc_b.reshape(1, 1).astype(jnp.float32)

    out2d = pl.pallas_call(
        lr_kernel,
        out_shape=jax.ShapeDtypeStruct((G_pad, _LANES), jnp.float32),
        grid=grid,
        in_specs=[
            pl.BlockSpec((gpt, Sp, _LANES), lambda i: (i, 0, 0)),   # idx (batch-tiled)
            pl.BlockSpec((C, _LANES), lambda i: (0, 0)),            # table (VMEM-resident)
            pl.BlockSpec((gpt, Nd, _LANES), lambda i: (i, 0, 0)),   # dense (batch-tiled)
            pl.BlockSpec((Sp, 1), lambda i: (0, 0)),                # sparse weights
            pl.BlockSpec((Nd, 1), lambda i: (0, 0)),                # dense weights
            pl.BlockSpec(memory_space=pltpu.MemorySpace.SMEM),      # bias scalar
        ],
        out_specs=pl.BlockSpec((gpt, _LANES), lambda i: (i, 0)),
        compiler_params=pltpu.CompilerParams(
            dimension_semantics=("parallel",),
            vmem_limit_bytes=32 * 1024 * 1024,
        ),
    )(idx_t, table_p, dense_t, ws_t, wd_t, b_p)

    # (G_pad, 128) row-major == batch order; reshape is free.
    return out2d.reshape(B_pad, 1)[:B]


def lr_layer_reference(sparse_idx, dense, emb_tables, fc_w, fc_b):
    sparse_emb = jnp.stack(
        [emb_tables[i][sparse_idx[:, i], 0] for i in range(sparse_idx.shape[1])],
        axis=1)                                                      # (B, S)
    dnn_input = jnp.concatenate([sparse_emb, dense], axis=1)         # (B, S+Nd)
    return dnn_input @ fc_w.T + fc_b[None, :]                        # (B, 1)


if __name__ == "__main__":
    key = jax.random.PRNGKey(0)

    # Synthetic enc_dict: 3 sparse features (vocab sizes 13, 7, 10) + 2 dense.
    vocab_sizes = [13, 7, 10]
    num_sparse = len(vocab_sizes)
    num_dense = 2
    D = num_sparse + num_dense
    B = 8

    keys = jax.random.split(key, 6 + num_sparse)
    emb_tables = [
        jax.random.normal(keys[i], (v + 1, 1), dtype=jnp.float32) * 0.1
        for i, v in enumerate(vocab_sizes)
    ]
    fc_w = jax.random.normal(keys[3], (1, D), dtype=jnp.float32) * 0.1
    fc_b = jax.random.normal(keys[4], (1,), dtype=jnp.float32) * 0.1
    dense = jax.random.normal(keys[5], (B, num_dense), dtype=jnp.float32)
    sparse_idx = jnp.stack(
        [jax.random.randint(keys[6 + i], (B,), 0, vocab_sizes[i] + 1)
         for i in range(num_sparse)],
        axis=1).astype(jnp.int32)                                    # (B, S)

    fwd = jax.jit(lr_layer_forward)
    out = fwd(sparse_idx, dense, emb_tables, fc_w, fc_b)
    out = jax.block_until_ready(out)

    ref = lr_layer_reference(sparse_idx, dense, emb_tables, fc_w, fc_b)
    assert out.shape == (B, 1)
    assert jnp.allclose(out, ref, atol=1e-5, rtol=1e-5), (out, ref)

    print("KERNEL_OK")
</pallas_src>

<mosaic_0001>
module attributes {stable_mosaic.version = 11 : i64} {
  func.func @lr_kernel(%arg0: i32, %arg1: memref<1x8x128xi32, #tpu.memory_space<vmem>>, %arg2: memref<1x128xf32, #tpu.memory_space<vmem>>, %arg3: memref<1x2x128xf32, #tpu.memory_space<vmem>>, %arg4: memref<8x1xf32, #tpu.memory_space<vmem>>, %arg5: memref<2x1xf32, #tpu.memory_space<vmem>>, %arg6: memref<1x1xf32, #tpu.memory_space<smem>>, %arg7: memref<1x128xf32, #tpu.memory_space<vmem>>) attributes {dimension_semantics = [#tpu.dimension_semantics<parallel>], iteration_bounds = array<i64: 1>, scalar_prefetch = 0 : i64, scratch_operands = 0 : i64, tpu.core_type = #tpu.core_type<tc>, window_params = [{transform_indices = @transform_0, window_bounds = array<i64: 1, 8, 128>}, {pipeline_mode = #tpu.pipeline_mode<synchronous>, transform_indices = @transform_1, window_bounds = array<i64: 1, 128>}, {transform_indices = @transform_2, window_bounds = array<i64: 1, 2, 128>}, {pipeline_mode = #tpu.pipeline_mode<synchronous>, transform_indices = @transform_3, window_bounds = array<i64: 8, 1>}, {pipeline_mode = #tpu.pipeline_mode<synchronous>, transform_indices = @transform_4, window_bounds = array<i64: 2, 1>}, {transform_indices = @transform_5, window_bounds = array<i64: 1, 1>}, {transform_indices = @transform_6, window_bounds = array<i64: 1, 128>}]} {
    %c0 = arith.constant 0 : index
    %c0_0 = arith.constant 0 : index
    %0 = vector.load %arg4[%c0, %c0_0] : memref<8x1xf32, #tpu.memory_space<vmem>>, vector<8x1xf32>
    %c0_1 = arith.constant 0 : index
    %c0_2 = arith.constant 0 : index
    %1 = vector.load %arg5[%c0_1, %c0_2] : memref<2x1xf32, #tpu.memory_space<vmem>>, vector<2x1xf32>
    %c0_3 = arith.constant 0 : index
    %c0_4 = arith.constant 0 : index
    %2 = memref.load %arg6[%c0_3, %c0_4] : memref<1x1xf32, #tpu.memory_space<smem>>
    %c0_5 = arith.constant 0 : index
    %c0_6 = arith.constant 0 : index
    %3 = vector.load %arg2[%c0_5, %c0_6] : memref<1x128xf32, #tpu.memory_space<vmem>>, vector<1x128xf32>
    %4 = vector.shape_cast %3 : vector<1x128xf32> to vector<1x128xf32>
    %5 = vector.broadcast %4 : vector<1x128xf32> to vector<8x128xf32>
    %c0_i32 = arith.constant 0 : i32
    %6 = arith.index_cast %c0_i32 : i32 to index
    %c0_7 = arith.constant 0 : index
    %c0_8 = arith.constant 0 : index
    %7 = vector.load %arg1[%6, %c0_7, %c0_8] : memref<1x8x128xi32, #tpu.memory_space<vmem>>, vector<1x8x128xi32>
    %8 = vector.shape_cast %7 : vector<1x8x128xi32> to vector<8x128xi32>
    %c127_i32 = arith.constant 127 : i32
    %9 = vector.broadcast %c127_i32 : i32 to vector<8x128xi32>
    %10 = arith.andi %8, %9 : vector<8x128xi32>
    %c0_i32_9 = arith.constant 0 : i32
    %11 = vector.broadcast %c0_i32_9 : i32 to vector<8x128xi32>
    %12 = arith.cmpi slt, %10, %11 : vector<8x128xi32>
    %c128_i32 = arith.constant 128 : i32
    %13 = vector.broadcast %c128_i32 : i32 to vector<8x128xi32>
    %14 = arith.addi %10, %13 : vector<8x128xi32>
    %15 = arith.select %12, %14, %10 : vector<8x128xi1>, vector<8x128xi32>
    %16 = vector.shape_cast %15 : vector<8x128xi32> to vector<8x128x1xi32>
    %17 = vector.shape_cast %16 : vector<8x128x1xi32> to vector<8x128xi32>
    %18 = tpu.dynamic_gather %5[%17] in [1] : vector<8x128xf32>, vector<8x128xi32> -> vector<8x128xf32>
    %19 = vector.broadcast %0 : vector<8x1xf32> to vector<8x128xf32>
    %20 = arith.mulf %18, %19 : vector<8x128xf32>
    %cst = arith.constant dense<0.000000e+00> : vector<128xf32>
    %21 = vector.multi_reduction <add>, %20, %cst [0] : vector<8x128xf32> to vector<128xf32>
    %22 = vector.shape_cast %21 : vector<128xf32> to vector<1x128xf32>
    %23 = arith.index_cast %c0_i32 : i32 to index
    %c0_10 = arith.constant 0 : index
    %c0_11 = arith.constant 0 : index
    %24 = vector.load %arg3[%23, %c0_10, %c0_11] : memref<1x2x128xf32, #tpu.memory_space<vmem>>, vector<1x2x128xf32>
    %25 = vector.shape_cast %24 : vector<1x2x128xf32> to vector<2x128xf32>
    %26 = vector.broadcast %1 : vector<2x1xf32> to vector<2x128xf32>
    %27 = arith.mulf %25, %26 : vector<2x128xf32>
    %cst_12 = arith.constant dense<0.000000e+00> : vector<128xf32>
    %28 = vector.multi_reduction <add>, %27, %cst_12 [0] : vector<2x128xf32> to vector<128xf32>
    %29 = vector.shape_cast %28 : vector<128xf32> to vector<1x128xf32>
    %30 = arith.addf %22, %29 : vector<1x128xf32>
    %31 = vector.broadcast %2 : f32 to vector<1x128xf32>
    %32 = arith.addf %30, %31 : vector<1x128xf32>
    %33 = arith.index_cast %c0_i32 : i32 to index
    %c0_13 = arith.constant 0 : index
    %34 = vector.load %arg7[%33, %c0_13] : memref<1x128xf32, #tpu.memory_space<vmem>>, vector<1x128xf32>
    tpu.vector_store %arg7[%33, %c0_13], %32 {strides = array<i32>} : memref<1x128xf32, #tpu.memory_space<vmem>>, vector<1x128xf32>,
    %c1_i32 = arith.constant 1 : i32
    return
  }
  func.func @transform_0(%arg0: i32) -> (i32, i32, i32) {
    %c0_i32 = arith.constant 0 : i32
    %c0_i32_0 = arith.constant 0 : i32
    %c0_i32_1 = arith.constant 0 : i32
    return %arg0, %c0_i32, %c0_i32_0 : i32, i32, i32
  }
  func.func @transform_1(%arg0: i32) -> (i32, i32) {
    %c0_i32 = arith.constant 0 : i32
    %c0_i32_0 = arith.constant 0 : i32
    %c0_i32_1 = arith.constant 0 : i32
    return %c0_i32, %c0_i32_0 : i32, i32
  }
  func.func @transform_2(%arg0: i32) -> (i32, i32, i32) {
    %c0_i32 = arith.constant 0 : i32
    %c0_i32_0 = arith.constant 0 : i32
    %c0_i32_1 = arith.constant 0 : i32
    return %arg0, %c0_i32, %c0_i32_0 : i32, i32, i32
  }
  func.func @transform_3(%arg0: i32) -> (i32, i32) {
    %c0_i32 = arith.constant 0 : i32
    %c0_i32_0 = arith.constant 0 : i32
    %c0_i32_1 = arith.constant 0 : i32
    return %c0_i32, %c0_i32_0 : i32, i32
  }
  func.func @transform_4(%arg0: i32) -> (i32, i32) {
    %c0_i32 = arith.constant 0 : i32
    %c0_i32_0 = arith.constant 0 : i32
    %c0_i32_1 = arith.constant 0 : i32
    return %c0_i32, %c0_i32_0 : i32, i32
  }
  func.func @transform_5(%arg0: i32) -> (i32, i32) {
    %c0_i32 = arith.constant 0 : i32
    %c0_i32_0 = arith.constant 0 : i32
    %c0_i32_1 = arith.constant 0 : i32
    return %c0_i32, %c0_i32_0 : i32, i32
  }
  func.func @transform_6(%arg0: i32) -> (i32, i32) {
    %c0_i32 = arith.constant 0 : i32
    %c0_i32_0 = arith.constant 0 : i32
    return %arg0, %c0_i32 : i32, i32
  }
}

</mosaic_0001>

<bundles_post_ra>
// kernel: lr_layer_forward.1
= control target key start
LH: loop header
LB: loop body
LE: loop exit
PB: predicated region body
PF: predicated region fallthrough
CT: control target
= control target key end

     0   :  { %v83_v0 = vmov 0   ;;  %vm61_vm1 = vcmask 1041408   ;;  %s140_s4 = inlined_call_operand.vmem [shape: f32[2,1], index: 4, kind: input, shape index: {}]   ;;  %s141_s0 = inlined_call_operand.vmem [shape: s32[1,8,128], index: 0, kind: input, shape index: {}]   ;;  %s142_s3 = inlined_call_operand.vmem [shape: f32[8,1], index: 3, kind: input, shape index: {}]   ;;  %s143_s1 = inlined_call_operand.vmem [shape: f32[1,128], index: 1, kind: input, shape index: {}]   ;;  %s144_s2 = inlined_call_operand.vmem [shape: f32[1,2,128], index: 2, kind: input, shape index: {}]   ;;  %s145_s5 = inlined_call_operand.<no memory space> [shape: f32[1,1], index: 5, kind: input, shape index: {}]   ;;  %s146_s6 = inlined_call_operand.vmem [shape: f32[1,128], index: 6, kind: output, shape index: {}]  }
   0x1   :  { %79 = vset.pattern.permute.xlu0 %v83_v0  ;;  %v25_v1 = vld [vmem:[%s140_s4] sm:$0x3]  ;;  %81 = vset.pattern.permute.xlu1 %v83_v0  ;;  %v70_v27 = vstv %s145_s5 }
   0x2   :  { %v34_v2 = vld [vmem:[%s141_s0] sm:$0xff]  ;;  %57 = vperm.xlu0 %79, %v25_v1  }
   0x3   :  { %v24_v3 = vld [vmem:[%s142_s3] sm:$0xff]  ;;  %v35_v4 = vand.u32 127, %v34_v2 }
   0x4   :  { %44 = vperm.xlu1 %81, %v24_v3   ;;  %v77_v7 = vld [vmem:[%s143_s1] ss:$0 sm:$0xff] }
   0x5   :  { %vm36_vm0 = vcmp.lt.s32.totalorder %v35_v4, 0  ;;  %v37_v5 = vadd.s32 128, %v35_v4  ;;  %v54_v8 = vld [vmem:[%s144_s2] sm:$0x3] }
   0x7   :  { %v38_v6 = vsel %vm36_vm0, %v37_v5, %v35_v4 }
   0x8   :  { %80 = vset.pattern.permute.xlu0 %v38_v6 }
   0xc   :  { %40 = vperm.xlu0 %80, %v77_v7  }
  0x10   :  { %82 = vset.pattern.permute.xlu0 %v83_v0 }
  0x7d   :  { %v58_v9 = vpop.permute.xlu0 %57 }
  0x7e   :  { %v60_v10 = vmul.f32 %v58_v9, %v54_v8 }
  0x7f   :  { %v45_v14 = vpop.permute.xlu1 %44 }
  0x80   :  { %v62_v11 = vsel %vm61_vm1, %v60_v10, 0.0 }
  0x81   :  { %v63_v12 = vrot.slane %v62_v11, 4 }
  0x83   :  { %v64_v13 = vadd.f32 %v63_v12, %v62_v11 }
  0x85   :  { %v65_v16 = vrot.slane %v64_v13, 2 }
  0x87   :  { %v41_v15 = vpop.permute.xlu0 %40  ;;  %v66_v19 = vadd.f32 %v65_v16, %v64_v13 }
  0x88   :  { %v47_v17 = vmul.f32 %v45_v14, %v41_v15 }
  0x89   :  { %v67_v22 = vrot.slane %v66_v19, 1 }
  0x8a   :  { %v48_v18 = vrot.slane %v47_v17, 4 }
  0x8b   :  { %v68_v25 = vadd.f32 %v67_v22, %v66_v19 }
  0x8c   :  { %v49_v20 = vadd.f32 %v48_v18, %v47_v17 }
  0x8e   :  { %v50_v21 = vrot.slane %v49_v20, 2 }
  0x90   :  { %v51_v23 = vadd.f32 %v50_v21, %v49_v20 }
  0x92   :  { %v52_v24 = vrot.slane %v51_v23, 1 }
  0x94   :  { %v53_v26 = vadd.f32 %v52_v24, %v51_v23 }
  0x96   :  { %v69_v28 = vadd.f32 %v68_v25, %v53_v26 }
  0x98   :  { %v71_v29 = vadd.f32 %v70_v27, %v69_v28 }
  0x9a   :  { %72 = vst [vmem:[%s146_s6] sm:$0x1] %v71_v29 }

</bundles_post_ra>
